<compile_context>
chip_gen: v5e
topology: v5e:2x2
jax: 0.10.0
libtpu: 0.0.40
codegen_flags: <defaults>
</compile_context>

<pallas_src>
import functools

import jax
import jax.numpy as jnp
from jax.experimental import pallas as pl
from jax.experimental.pallas import tpu as pltpu


def _round_up(x, m):
    return -(-x // m) * m


# ----------------------------------------------------------------------------
# Pallas kernel: 1x1 conv (BN scale folded) + max over K + dp correction +
#                shift + ReLU, emitted directly in (B, Cout, M) layout.
# ----------------------------------------------------------------------------
def _sa_conv_pool_kernel(x_ref, q_ref, wt_ref, wq_ref, shift_ref, o_ref, *,
                         chunk):
    # x_ref:     (K, Cpad, tm) bf16  neighbor-major; channels on sublanes,
    #                                query points on lanes (lane-dense).
    #                                channels = [abs xyz | fj | zero pad]
    # q_ref:     (8, tm)       bf16  query xyz, channel-major, zero padded
    # wt_ref:    (Cout, Cpad)  bf16  conv weight^T with BN scale folded in
    # wq_ref:    (Cout, 8)     bf16  -(folded W_xyz)^T  -> dp correction
    # shift_ref: (Cout, 1)     f32   BN shift (beta - mean*scale)
    # o_ref:     (Cout, tm)    bf16
    K, _, tm = x_ref.shape
    wt = wt_ref[...]
    wq = wq_ref[...]
    shift = shift_ref[...]
    n_chunks = tm // chunk

    def compute_chunk(sl):
        # K small MXU matmuls fused with the running max over neighbors.
        acc = jnp.dot(wt, x_ref[0, :, sl], preferred_element_type=jnp.float32)
        for k in range(1, K):                 # K static & small -> unrolled
            acc = jnp.maximum(
                acc, jnp.dot(wt, x_ref[k, :, sl],
                             preferred_element_type=jnp.float32))
        # dp correction:  conv(dp;fj) = conv(abs_xyz;fj) - W_xyz @ new_p.
        # The correction is constant over K, so it commutes with the max.
        corr = jnp.dot(wq, q_ref[:, sl], preferred_element_type=jnp.float32)
        # shift + ReLU after the K-max (exact: per-channel constant, monotone).
        y = jnp.maximum(acc + corr + shift, 0.0)
        o_ref[:, sl] = y.astype(o_ref.dtype)

    if n_chunks == 1:
        compute_chunk(pl.ds(0, chunk))
    else:
        # Rolled loop over lane chunks bounds the accumulator live range
        # (~16 f32 vregs per chunk) -> no vreg spills even at large tm.
        def body(c, carry):
            start = pl.multiple_of(c * chunk, chunk)
            compute_chunk(pl.ds(start, chunk))
            return carry

        jax.lax.fori_loop(0, n_chunks, body, 0)


def _lane_chunk(tm):
    for c in (512, 256, 128):
        if tm % c == 0:
            return c
    return tm


def sa_conv_bn_relu_maxpool(x, q, wt, wq, shift, *, tm):
    """x: (B,K,Cpad,Mp) bf16, q: (B,8,Mp) bf16, wt: (Cout,Cpad) bf16,
    wq: (Cout,8) bf16, shift: (Cout,1) f32.  Returns (B, Cout, Mp) bf16."""
    B, K, Cpad, Mp = x.shape
    Cout = wt.shape[0]
    assert tm % 128 == 0 and Mp % tm == 0
    kernel = functools.partial(_sa_conv_pool_kernel, chunk=_lane_chunk(tm))
    return pl.pallas_call(
        kernel,
        out_shape=jax.ShapeDtypeStruct((B, Cout, Mp), jnp.bfloat16),
        grid_spec=pltpu.PrefetchScalarGridSpec(
            num_scalar_prefetch=0,
            grid=(B, Mp // tm),
            in_specs=[
                pl.BlockSpec((None, K, Cpad, tm), lambda b, i: (b, 0, 0, i)),
                pl.BlockSpec((None, 8, tm), lambda b, i: (b, 0, i)),
                pl.BlockSpec((Cout, Cpad), lambda b, i: (0, 0)),
                pl.BlockSpec((Cout, 8), lambda b, i: (0, 0)),
                pl.BlockSpec((Cout, 1), lambda b, i: (0, 0)),
            ],
            out_specs=pl.BlockSpec((None, Cout, tm), lambda b, i: (b, 0, i)),
        ),
        compiler_params=pltpu.CompilerParams(
            dimension_semantics=("parallel", "parallel")),
    )(x, q, wt, wq, shift)


def _tile_plan(M, batch, tm_req=4096):
    """Per-batch lane tile (multiple of 128) and padded point count Mp."""
    tm_req = max(128, _round_up(tm_req, 128))
    n = max(1, -(-M // tm_req))
    if batch * n < 2 and M > 256:
        # ensure >= 2 parallel grid steps so both v7x TensorCores get work
        # (costs one extra ~0.35 us grid step on single-TC v5e/v6e).
        n = 2
    tm = _round_up(-(-M // n), 128)
    return tm, n * tm


# ----------------------------------------------------------------------------
# Plain-JAX glue: FPS sampling, ball-query grouping
# ----------------------------------------------------------------------------
# TODO(synk): FPS and ball-query are data-dependent argmax/sort loops with no
# clean static-BlockSpec Pallas equivalent; they stay in plain JAX.  A further
# step would be feeding idx_g via scalar prefetch and gathering neighbors
# in-kernel so the (B,K,Cpad,Mp) intermediate never round-trips HBM.
def furthest_point_sample(p, npoint):
    """p: (B, N, 3) -> int32 indices (B, npoint). Matches the CUDA FPS op."""
    B, N, _ = p.shape

    def body(i, state):
        idxs, dists, last = state
        last_p = p[jnp.arange(B), last][:, None, :]          # (B, 1, 3)
        d = jnp.sum((p - last_p) ** 2, axis=-1)              # (B, N)
        dists = jnp.minimum(dists, d)
        nxt = jnp.argmax(dists, axis=-1).astype(jnp.int32)   # (B,)
        idxs = idxs.at[:, i].set(nxt)
        return idxs, dists, nxt

    idxs = jnp.zeros((B, npoint), jnp.int32)                 # first pick = 0
    dists = jnp.full((B, N), 1e10, jnp.float32)
    last = jnp.zeros((B,), jnp.int32)
    idxs, _, _ = jax.lax.fori_loop(1, npoint, body, (idxs, dists, last))
    return idxs


def ball_query(radius, nsample, support, query):
    """support: (B,N,3), query: (B,M,3) -> int32 (B,M,nsample).

    Empty slots are padded with the first hit.  Every query point is itself a
    support point (distance 0 < radius), so a first hit always exists.
    """
    N = support.shape[1]
    d2 = jnp.sum((query[:, :, None, :] - support[:, None, :, :]) ** 2, axis=-1)
    in_ball = d2 < radius ** 2                               # (B, M, N)
    order = jnp.where(in_ball, jnp.arange(N)[None, None, :], N)
    sorted_idx = jnp.sort(order, axis=-1)[..., :nsample]     # first nsample hits
    first = sorted_idx[..., :1]
    first = jnp.where(first >= N, 0, first)
    idx = jnp.where(sorted_idx >= N, first, sorted_idx)      # pad with first hit
    return idx.astype(jnp.int32)


def _gather_points(x_cl, idx):
    """x_cl: (B, N, C), idx: (B, M, K) int32 -> (B, M, K, C).  (reference only)"""
    B, M, K = idx.shape
    C = x_cl.shape[-1]
    flat = jnp.take_along_axis(x_cl, idx.reshape(B, M * K, 1), axis=1)
    return flat.reshape(B, M, K, C)


def set_abstraction_forward(p, f, params, *, stride=2, radius=0.5, nsample=8,
                            tm_req=4096):
    """p: (B, N, 3) f32, f: (B, Cin, N) f32 (torch layouts).

    Returns (new_p, new_f): new_p (B, M, 3) f32, new_f (B, Cout, M) bf16.
    """
    B, N, _ = p.shape
    Cin = f.shape[1]
    M = N // stride
    Cout = params["w"].shape[1]
    C = 3 + Cin
    Cpad = _round_up(C, 8)
    K = nsample

    # --- sample (FPS) + gather new_p
    idx_s = furthest_point_sample(p, M)                           # (B, M)
    new_p = jnp.take_along_axis(p, idx_s[..., None], axis=1)      # (B, M, 3)

    # --- group (ballquery); relative_xyz (dp) is handled in-kernel
    idx_g = ball_query(radius, nsample, p, new_p)                 # (B, M, K)

    tm, Mp = _tile_plan(M, B, tm_req)

    # Center coordinates per batch before the bf16 cast: dp is invariant and
    # bf16 rounding then scales with the cloud extent, not its absolute offset.
    center = jnp.mean(p, axis=1, keepdims=True)                   # (B, 1, 3)
    p_cm = jnp.transpose(p - center, (0, 2, 1))                   # (B, 3, N)
    support = jnp.concatenate(
        [p_cm, f, jnp.zeros((B, Cpad - C, N), f.dtype)], axis=1)  # (B, Cpad, N)
    support = support.astype(jnp.bfloat16)

    # --- gather neighbors straight into the kernel layout (B, K, Cpad, Mp):
    # no point-major (B,M,K,C) intermediate, no transpose/pad/cast HBM pass.
    idx_t = jnp.transpose(idx_g, (0, 2, 1))                       # (B, K, M)
    idx_t = jnp.pad(idx_t, ((0, 0), (0, 0), (0, Mp - M)))         # pad -> idx 0
    x = jnp.take_along_axis(support[:, None, :, :],               # (B,1,Cpad,N)
                            idx_t[:, :, None, :],                 # (B,K,1,Mp)
                            axis=3)                               # (B,K,Cpad,Mp)

    # --- query coords channel-major (for the in-kernel dp correction)
    q_cm = jnp.transpose(new_p - center, (0, 2, 1))               # (B, 3, M)
    q_cm = jnp.pad(q_cm, ((0, 0), (0, 8 - 3), (0, Mp - M)))
    q_cm = q_cm.astype(jnp.bfloat16)                              # (B, 8, Mp)

    # --- fold BN(eval) scale into the conv weight (exact: conv has no bias,
    #     scale > 0 so scaling commutes with the max over K).
    w_folded = params["w"] * params["scale"]                      # (C, Cout)
    wt = jnp.pad(w_folded.T, ((0, 0), (0, Cpad - C))).astype(jnp.bfloat16)
    wq = jnp.pad(-w_folded[:3].T, ((0, 0), (0, 8 - 3))).astype(jnp.bfloat16)
    shift_col = params["shift"].reshape(Cout, 1).astype(jnp.float32)

    # --- conv + bn + relu + maxpool in the Pallas kernel
    out = sa_conv_bn_relu_maxpool(x, q_cm, wt, wq, shift_col, tm=tm)
    new_f = out[:, :, :M]                                         # (B, Cout, M)
    return new_p, new_f


# ----------------------------------------------------------------------------
# Parameter construction (deterministic, matches module __init__ shapes)
# ----------------------------------------------------------------------------
def make_params(key, in_channels, out_channels):
    C = in_channels + 3                      # CHANNEL_MAP['dp_fj']
    k1, k2, k3, k4, k5 = jax.random.split(key, 5)
    # Conv2d(C, Cout, 1, bias=False) weight (Cout, C, 1, 1) stored as (C, Cout)
    w = jax.random.normal(k1, (C, out_channels), jnp.float32) * 0.1
    # BatchNorm2d params + running stats (eval mode), folded to scale/shift.
    gamma = 0.5 + jax.random.uniform(k2, (1, out_channels), jnp.float32)
    beta = 0.1 * jax.random.normal(k3, (1, out_channels), jnp.float32)
    r_mean = 0.1 * jax.random.normal(k4, (1, out_channels), jnp.float32)
    r_var = 0.5 + jax.random.uniform(k5, (1, out_channels), jnp.float32)
    eps = 1e-5
    scale = gamma / jnp.sqrt(r_var + eps)
    shift = beta - r_mean * scale
    return {"w": w, "scale": scale, "shift": shift}


# ----------------------------------------------------------------------------
# Pure-JAX f32 reference for the hot path (correctness check)
# ----------------------------------------------------------------------------
def _reference_conv_pool(x, w, scale, shift):
    y = jnp.einsum("gkc,co->gko", x, w)
    y = y * scale[None] + shift[None]
    y = jnp.maximum(y, 0.0)
    return jnp.max(y, axis=1)


if __name__ == "__main__":
    B, N, Cin, Cout = 2, 16, 4, 32
    stride, radius, nsample = 2, 0.5, 8

    key = jax.random.PRNGKey(0)
    kp, kf, kw = jax.random.split(key, 3)
    p = jax.random.uniform(kp, (B, N, 3), jnp.float32)           # (B, N, 3)
    f = jax.random.normal(kf, (B, Cin, N), jnp.float32)          # (B, Cin, N)
    params = make_params(kw, Cin, Cout)

    fwd = jax.jit(functools.partial(set_abstraction_forward, stride=stride,
                                    radius=radius, nsample=nsample))
    new_p, new_f = fwd(p, f, params)
    jax.block_until_ready((new_p, new_f))

    M = N // stride
    assert new_p.shape == (B, M, 3)
    assert new_f.shape == (B, Cout, M)

    # cross-check kernel output against a pure-JAX f32 reference of the hot path
    idx_g = ball_query(radius, nsample, p, new_p)
    dp = _gather_points(p, idx_g) - new_p[:, :, None, :]
    fj = _gather_points(jnp.transpose(f, (0, 2, 1)), idx_g)
    x = jnp.concatenate([dp, fj], axis=-1).reshape(B * M, nsample, 3 + Cin)
    ref = _reference_conv_pool(x, params["w"], params["scale"], params["shift"])
    ref = jnp.transpose(ref.reshape(B, M, Cout), (0, 2, 1))
    # kernel uses bf16 inputs/weights/outputs with f32 accumulation
    assert jnp.allclose(new_f.astype(jnp.float32), ref,
                        atol=3e-2, rtol=3e-2), "kernel mismatch"

    print("KERNEL_OK")
</pallas_src>

<mosaic_0001>
module attributes {stable_mosaic.version = 11 : i64} {
  func.func @_sa_conv_pool_kernel(%arg0: i32, %arg1: i32, %arg2: memref<1x8x8x128xbf16, #tpu.memory_space<vmem>>, %arg3: memref<1x8x128xbf16, #tpu.memory_space<vmem>>, %arg4: memref<32x8xbf16, #tpu.memory_space<vmem>>, %arg5: memref<32x8xbf16, #tpu.memory_space<vmem>>, %arg6: memref<32x1xf32, #tpu.memory_space<vmem>>, %arg7: memref<1x32x128xbf16, #tpu.memory_space<vmem>>) attributes {dimension_semantics = [#tpu.dimension_semantics<parallel>, #tpu.dimension_semantics<parallel>], iteration_bounds = array<i64: 2, 1>, scalar_prefetch = 0 : i64, scratch_operands = 0 : i64, tpu.core_type = #tpu.core_type<tc>, window_params = [{transform_indices = @transform_0, window_bounds = array<i64: 1, 8, 8, 128>}, {transform_indices = @transform_1, window_bounds = array<i64: 1, 8, 128>}, {pipeline_mode = #tpu.pipeline_mode<synchronous>, transform_indices = @transform_2, window_bounds = array<i64: 32, 8>}, {pipeline_mode = #tpu.pipeline_mode<synchronous>, transform_indices = @transform_3, window_bounds = array<i64: 32, 8>}, {pipeline_mode = #tpu.pipeline_mode<synchronous>, transform_indices = @transform_4, window_bounds = array<i64: 32, 1>}, {transform_indices = @transform_5, window_bounds = array<i64: 1, 32, 128>}]} {
    %c0 = arith.constant 0 : index
    %c0_0 = arith.constant 0 : index
    %0 = vector.load %arg4[%c0, %c0_0] : memref<32x8xbf16, #tpu.memory_space<vmem>>, vector<32x8xbf16>
    %c0_1 = arith.constant 0 : index
    %c0_2 = arith.constant 0 : index
    %1 = vector.load %arg5[%c0_1, %c0_2] : memref<32x8xbf16, #tpu.memory_space<vmem>>, vector<32x8xbf16>
    %c0_3 = arith.constant 0 : index
    %c0_4 = arith.constant 0 : index
    %2 = vector.load %arg6[%c0_3, %c0_4] : memref<32x1xf32, #tpu.memory_space<vmem>>, vector<32x1xf32>
    %c0_5 = arith.constant 0 : index
    %c0_6 = arith.constant 0 : index
    %c0_7 = arith.constant 0 : index
    %c0_8 = arith.constant 0 : index
    %3 = vector.load %arg2[%c0_5, %c0_6, %c0_7, %c0_8] : memref<1x8x8x128xbf16, #tpu.memory_space<vmem>>, vector<1x1x8x128xbf16>
    %4 = vector.shape_cast %3 : vector<1x1x8x128xbf16> to vector<8x128xbf16>
    %cst = arith.constant dense<0.000000e+00> : vector<32x128xf32>
    %5 = tpu.matmul %0, %4, %cst {dimension_numbers = #tpu.dot_dimension_numbers<[1], [0], [0], [1], [0, 0, 1, 1], [], []>} : vector<32x8xbf16>, vector<8x128xbf16>, vector<32x128xf32> -> vector<32x128xf32>
    %c0_9 = arith.constant 0 : index
    %c1 = arith.constant 1 : index
    %c0_10 = arith.constant 0 : index
    %c0_11 = arith.constant 0 : index
    %6 = vector.load %arg2[%c0_9, %c1, %c0_10, %c0_11] : memref<1x8x8x128xbf16, #tpu.memory_space<vmem>>, vector<1x1x8x128xbf16>
    %7 = vector.shape_cast %6 : vector<1x1x8x128xbf16> to vector<8x128xbf16>
    %cst_12 = arith.constant dense<0.000000e+00> : vector<32x128xf32>
    %8 = tpu.matmul %0, %7, %cst_12 {dimension_numbers = #tpu.dot_dimension_numbers<[1], [0], [0], [1], [0, 0, 1, 1], [], []>} : vector<32x8xbf16>, vector<8x128xbf16>, vector<32x128xf32> -> vector<32x128xf32>
    %9 = arith.maximumf %5, %8 : vector<32x128xf32>
    %c0_13 = arith.constant 0 : index
    %c2 = arith.constant 2 : index
    %c0_14 = arith.constant 0 : index
    %c0_15 = arith.constant 0 : index
    %10 = vector.load %arg2[%c0_13, %c2, %c0_14, %c0_15] : memref<1x8x8x128xbf16, #tpu.memory_space<vmem>>, vector<1x1x8x128xbf16>
    %11 = vector.shape_cast %10 : vector<1x1x8x128xbf16> to vector<8x128xbf16>
    %cst_16 = arith.constant dense<0.000000e+00> : vector<32x128xf32>
    %12 = tpu.matmul %0, %11, %cst_16 {dimension_numbers = #tpu.dot_dimension_numbers<[1], [0], [0], [1], [0, 0, 1, 1], [], []>} : vector<32x8xbf16>, vector<8x128xbf16>, vector<32x128xf32> -> vector<32x128xf32>
    %13 = arith.maximumf %9, %12 : vector<32x128xf32>
    %c0_17 = arith.constant 0 : index
    %c3 = arith.constant 3 : index
    %c0_18 = arith.constant 0 : index
    %c0_19 = arith.constant 0 : index
    %14 = vector.load %arg2[%c0_17, %c3, %c0_18, %c0_19] : memref<1x8x8x128xbf16, #tpu.memory_space<vmem>>, vector<1x1x8x128xbf16>
    %15 = vector.shape_cast %14 : vector<1x1x8x128xbf16> to vector<8x128xbf16>
    %cst_20 = arith.constant dense<0.000000e+00> : vector<32x128xf32>
    %16 = tpu.matmul %0, %15, %cst_20 {dimension_numbers = #tpu.dot_dimension_numbers<[1], [0], [0], [1], [0, 0, 1, 1], [], []>} : vector<32x8xbf16>, vector<8x128xbf16>, vector<32x128xf32> -> vector<32x128xf32>
    %17 = arith.maximumf %13, %16 : vector<32x128xf32>
    %c0_21 = arith.constant 0 : index
    %c4 = arith.constant 4 : index
    %c0_22 = arith.constant 0 : index
    %c0_23 = arith.constant 0 : index
    %18 = vector.load %arg2[%c0_21, %c4, %c0_22, %c0_23] : memref<1x8x8x128xbf16, #tpu.memory_space<vmem>>, vector<1x1x8x128xbf16>
    %19 = vector.shape_cast %18 : vector<1x1x8x128xbf16> to vector<8x128xbf16>
    %cst_24 = arith.constant dense<0.000000e+00> : vector<32x128xf32>
    %20 = tpu.matmul %0, %19, %cst_24 {dimension_numbers = #tpu.dot_dimension_numbers<[1], [0], [0], [1], [0, 0, 1, 1], [], []>} : vector<32x8xbf16>, vector<8x128xbf16>, vector<32x128xf32> -> vector<32x128xf32>
    %21 = arith.maximumf %17, %20 : vector<32x128xf32>
    %c0_25 = arith.constant 0 : index
    %c5 = arith.constant 5 : index
    %c0_26 = arith.constant 0 : index
    %c0_27 = arith.constant 0 : index
    %22 = vector.load %arg2[%c0_25, %c5, %c0_26, %c0_27] : memref<1x8x8x128xbf16, #tpu.memory_space<vmem>>, vector<1x1x8x128xbf16>
    %23 = vector.shape_cast %22 : vector<1x1x8x128xbf16> to vector<8x128xbf16>
    %cst_28 = arith.constant dense<0.000000e+00> : vector<32x128xf32>
    %24 = tpu.matmul %0, %23, %cst_28 {dimension_numbers = #tpu.dot_dimension_numbers<[1], [0], [0], [1], [0, 0, 1, 1], [], []>} : vector<32x8xbf16>, vector<8x128xbf16>, vector<32x128xf32> -> vector<32x128xf32>
    %25 = arith.maximumf %21, %24 : vector<32x128xf32>
    %c0_29 = arith.constant 0 : index
    %c6 = arith.constant 6 : index
    %c0_30 = arith.constant 0 : index
    %c0_31 = arith.constant 0 : index
    %26 = vector.load %arg2[%c0_29, %c6, %c0_30, %c0_31] : memref<1x8x8x128xbf16, #tpu.memory_space<vmem>>, vector<1x1x8x128xbf16>
    %27 = vector.shape_cast %26 : vector<1x1x8x128xbf16> to vector<8x128xbf16>
    %cst_32 = arith.constant dense<0.000000e+00> : vector<32x128xf32>
    %28 = tpu.matmul %0, %27, %cst_32 {dimension_numbers = #tpu.dot_dimension_numbers<[1], [0], [0], [1], [0, 0, 1, 1], [], []>} : vector<32x8xbf16>, vector<8x128xbf16>, vector<32x128xf32> -> vector<32x128xf32>
    %29 = arith.maximumf %25, %28 : vector<32x128xf32>
    %c0_33 = arith.constant 0 : index
    %c7 = arith.constant 7 : index
    %c0_34 = arith.constant 0 : index
    %c0_35 = arith.constant 0 : index
    %30 = vector.load %arg2[%c0_33, %c7, %c0_34, %c0_35] : memref<1x8x8x128xbf16, #tpu.memory_space<vmem>>, vector<1x1x8x128xbf16>
    %31 = vector.shape_cast %30 : vector<1x1x8x128xbf16> to vector<8x128xbf16>
    %cst_36 = arith.constant dense<0.000000e+00> : vector<32x128xf32>
    %32 = tpu.matmul %0, %31, %cst_36 {dimension_numbers = #tpu.dot_dimension_numbers<[1], [0], [0], [1], [0, 0, 1, 1], [], []>} : vector<32x8xbf16>, vector<8x128xbf16>, vector<32x128xf32> -> vector<32x128xf32>
    %33 = arith.maximumf %29, %32 : vector<32x128xf32>
    %c0_37 = arith.constant 0 : index
    %c0_38 = arith.constant 0 : index
    %c0_39 = arith.constant 0 : index
    %34 = vector.load %arg3[%c0_37, %c0_38, %c0_39] : memref<1x8x128xbf16, #tpu.memory_space<vmem>>, vector<1x8x128xbf16>
    %35 = vector.shape_cast %34 : vector<1x8x128xbf16> to vector<8x128xbf16>
    %cst_40 = arith.constant dense<0.000000e+00> : vector<32x128xf32>
    %36 = tpu.matmul %1, %35, %cst_40 {dimension_numbers = #tpu.dot_dimension_numbers<[1], [0], [0], [1], [0, 0, 1, 1], [], []>} : vector<32x8xbf16>, vector<8x128xbf16>, vector<32x128xf32> -> vector<32x128xf32>
    %37 = arith.addf %33, %36 : vector<32x128xf32>
    %38 = vector.broadcast %2 : vector<32x1xf32> to vector<32x128xf32>
    %39 = arith.addf %37, %38 : vector<32x128xf32>
    %cst_41 = arith.constant 0.000000e+00 : f32
    %40 = vector.broadcast %cst_41 : f32 to vector<32x128xf32>
    %41 = arith.maximumf %39, %40 : vector<32x128xf32>
    %42 = arith.truncf %41 : vector<32x128xf32> to vector<32x128xbf16>
    %c0_42 = arith.constant 0 : index
    %c0_43 = arith.constant 0 : index
    %c0_44 = arith.constant 0 : index
    %43 = vector.load %arg7[%c0_42, %c0_43, %c0_44] : memref<1x32x128xbf16, #tpu.memory_space<vmem>>, vector<1x32x128xbf16>
    %44 = vector.shape_cast %43 : vector<1x32x128xbf16> to vector<32x128xbf16>
    %45 = vector.shape_cast %42 : vector<32x128xbf16> to vector<1x32x128xbf16>
    tpu.vector_store %arg7[%c0_42, %c0_43, %c0_44], %45 {strides = array<i32>} : memref<1x32x128xbf16, #tpu.memory_space<vmem>>, vector<1x32x128xbf16>,
    return
  }
  func.func @transform_0(%arg0: i32, %arg1: i32) -> (i32, i32, i32, i32) {
    %c0_i32 = arith.constant 0 : i32
    %c0_i32_0 = arith.constant 0 : i32
    %c0_i32_1 = arith.constant 0 : i32
    return %arg0, %c0_i32, %c0_i32_0, %arg1 : i32, i32, i32, i32
  }
  func.func @transform_1(%arg0: i32, %arg1: i32) -> (i32, i32, i32) {
    %c0_i32 = arith.constant 0 : i32
    %c0_i32_0 = arith.constant 0 : i32
    return %arg0, %c0_i32, %arg1 : i32, i32, i32
  }
  func.func @transform_2(%arg0: i32, %arg1: i32) -> (i32, i32) {
    %c0_i32 = arith.constant 0 : i32
    %c0_i32_0 = arith.constant 0 : i32
    %c0_i32_1 = arith.constant 0 : i32
    return %c0_i32, %c0_i32_0 : i32, i32
  }
  func.func @transform_3(%arg0: i32, %arg1: i32) -> (i32, i32) {
    %c0_i32 = arith.constant 0 : i32
    %c0_i32_0 = arith.constant 0 : i32
    %c0_i32_1 = arith.constant 0 : i32
    return %c0_i32, %c0_i32_0 : i32, i32
  }
  func.func @transform_4(%arg0: i32, %arg1: i32) -> (i32, i32) {
    %c0_i32 = arith.constant 0 : i32
    %c0_i32_0 = arith.constant 0 : i32
    %c0_i32_1 = arith.constant 0 : i32
    return %c0_i32, %c0_i32_0 : i32, i32
  }
  func.func @transform_5(%arg0: i32, %arg1: i32) -> (i32, i32, i32) {
    %c0_i32 = arith.constant 0 : i32
    %c0_i32_0 = arith.constant 0 : i32
    return %arg0, %c0_i32, %arg1 : i32, i32, i32
  }
}

</mosaic_0001>

<bundles_post_ra>
// kernel: custom-call.6
= control target key start
LH: loop header
LB: loop body
LE: loop exit
PB: predicated region body
PF: predicated region fallthrough
CT: control target
= control target key end

     0   :  { %s6_s0 = inlined_call_operand.vmem [shape: f32[2,16], index: 0, kind: output, shape index: {}]  }

// kernel: set_abstraction_forward.1
= control target key start
LH: loop header
LB: loop body
LE: loop exit
PB: predicated region body
PF: predicated region fallthrough
CT: control target
= control target key end

     0   :  { %s864_s18 = smov 0   ;;  %s866_s19 = smov 0   ;;  %s956_s0 = inlined_call_operand.vmem [shape: bf16[2,8,8,128], index: 0, kind: input, shape index: {}]   ;;  %s957_s1 = inlined_call_operand.vmem [shape: bf16[2,8,128], index: 1, kind: input, shape index: {}]   ;;  %s958_s2 = inlined_call_operand.vmem [shape: bf16[32,8], index: 2, kind: input, shape index: {}]   ;;  %s959_s3 = inlined_call_operand.vmem [shape: bf16[32,8], index: 3, kind: input, shape index: {}]   ;;  %s960_s4 = inlined_call_operand.vmem [shape: f32[32,1], index: 4, kind: input, shape index: {}]   ;;  %s961_s5 = inlined_call_operand.vmem [shape: bf16[2,32,128], index: 5, kind: output, shape index: {}]  }
   0x1   :  { %s868_s20 = smov 0  }
   0x2 LB: > { %s27_s21 = sadd.s32 1, %s827_s19  ;;  %p715_p0 = scmp.ge.s32.totalorder %s831_s20, 1  ;;  %s831_s20 = sphi %s868_s20, %s15_s20   ;;  %s827_s19 = sphi %s866_s19, %s963_s19   ;;  %s823_s18 = sphi %s864_s18, %s962_s18  }
   0x3   : > { %p29_p1 = scmp.ge.s32.totalorder %s27_s21, 2  ;;  %p220_p2 = scmp.lt.s32.totalorder %s831_s20, 3 }
   0x5   : > { %s965_s21 = smov (%p29_p1, %s27_s21), 0  ;;  %p221_p3 = pnand %p715_p0, %p220_p2 }
   0x6   : > { %p261_p4 = scmp.lt.s32.totalorder (!%p221_p3), %s823_s18, 1 }
   0x7   : > { %224 = sbr.rel (%p221_p3) target bundleno = 234 (0xea), region = 40 }
   0xc   : > { %s967_s18 = smov (!%p261_p4, %s823_s18), 1  ;;  %vm315_vm0 = vcmask 1043456   ;;  %v766_v0 = vld [vmem:[%s958_s2] sm:$0xff]  ;;  %v767_v5 = vld [vmem:[%s958_s2 + $0x8] sm:$0xff]  ;;  %vm308_vm1 = vcmask 64512   ;;  %v833_v21 = vmov 0  }
   0xd   : > { %s764_s22 = sshll.u32 %s967_s18, 5  ;;  %s718_s23 = sshll.u32 %s967_s18, 2  ;;  %v293_v20 = vld [vmem:[%s960_s4] sm:$0xff]  ;;  %807 = vset.pattern.permute.xlu0 %v833_v21  ;;  %v295_v22 = vld [vmem:[%s960_s4 + $0x10] sm:$0xff]  ;;  %808 = vset.pattern.permute.xlu1 %v833_v21  ;;  %v294_v23 = vld [vmem:[%s960_s4 + $0x8] sm:$0xff] }
   0xe   : > { %s268_s26 = scalar_lea.vmem %s956_s0, %s764_s22  ;;  %s275_s8 = scalar_lea.vmem %s957_s1, %s718_s23  ;;  %579 = vperm.xlu0 %807, %v293_v20   ;;  %589 = vperm.xlu1 %808, %v295_v22   ;;  %v296_v24 = vld [vmem:[%s960_s4 + $0x18] sm:$0xff]  ;;  %v768_v25 = vld [vmem:[%s959_s3] sm:$0xff]  ;;  %v769_v26 = vld [vmem:[%s959_s3 + $0x8] sm:$0xff] }
   0xf   : > { %v297_v1 = vld [vmem:[%s268_s26] sm:$0xf]  ;;  %v731_v2 = vld [vmem:[%s268_s26 + $0x4] sm:$0xf]  ;;  %v734_v3 = vld [vmem:[%s268_s26 + $0x8] sm:$0xf] }
  0x10   : > { %v317_v4 = vsel %vm315_vm0, %v297_v1, 0  ;;  %v341_v6 = vsel %vm315_vm0, %v731_v2, 0  ;;  %v369_v7 = vsel %vm315_vm0, %v734_v3, 0  ;;  %v737_v8 = vld [vmem:[%s268_s26 + $0xc] sm:$0xf]  ;;  %s765_s25 = sshll.u32 %s967_s18, 4 }
  0x11   : > { %326 = vmatpush.bf16.msra.mxu0 %v317_v4  ;;  %781 = vmatpush.bf16.msra.mxu1 %v317_v4  ;;  %v397_v9 = vsel %vm315_vm0, %v737_v8, 0  ;;  %v740_v10 = vld [vmem:[%s268_s26 + $0x10] sm:$0xf]  ;;  %v746_v11 = vld [vmem:[%s268_s26 + $0x18] sm:$0xf]  ;;  %s283_s28 = scalar_lea.vmem %s961_s5, %s765_s25 }
  0x12   : > { %378 = vmatpush.bf16.msra.mxu2 %v369_v7  ;;  %v425_v12 = vsel %vm315_vm0, %v740_v10, 0  ;;  %v749_v13 = vld [vmem:[%s268_s26 + $0x1c] sm:$0xf]  ;;  %v743_v14 = vld [vmem:[%s268_s26 + $0x14] sm:$0xf]  ;;  %406 = vmatpush.bf16.msra.mxu3 %v397_v9  ;;  %v481_v15 = vsel %vm315_vm0, %v746_v11, 0 }
  0x13   : > { %v509_v16 = vsel %vm315_vm0, %v749_v13, 0  ;;  %v534_v17 = vld [vmem:[%s275_s8] sm:$0xf]  ;;  %v453_v18 = vsel %vm315_vm0, %v743_v14, 0 }
  0x14   : > { %729 = vmatmul.msk.bf16.vlgmr.msra.gmra.mxu0 %vm308_vm1, %v766_v0  ;;  %730 = vmatmul.msk.bf16.vlgmr.msra.gmra.mxu1 %vm308_vm1, %v767_v5  ;;  %v552_v19 = vsel %vm315_vm0, %v534_v17, 0 }
  0x15   : > { %350 = vmatpush.bf16.msrb.mxu1 %v341_v6  ;;  %434 = vmatpush.bf16.msrb.mxu0 %v425_v12 }
  0x16   : > { %735 = vmatmul.msk.bf16.vlgmr.msra.gmra.mxu2 %vm308_vm1, %v766_v0  ;;  %518 = vmatpush.bf16.msrb.mxu3 %v509_v16 }
  0x17   : > { %738 = vmatmul.msk.bf16.vlgmr.msra.gmra.mxu3 %vm308_vm1, %v766_v0  ;;  %490 = vmatpush.bf16.msrb.mxu2 %v481_v15 }
  0x18   : > { %584 = vperm.xlu0 %807, %v294_v23   ;;  %594 = vperm.xlu1 %808, %v296_v24  }
  0x19   : > { %462 = vmatpush.bf16.msra.mxu1 %v453_v18  ;;  %561 = vmatpush.bf16.msra.mxu0 %v552_v19 }
  0x24   : > { %732 = vmatmul.msk.bf16.vlgmr.msrb.gmra.mxu1 %vm308_vm1, %v766_v0  ;;  %741 = vmatmul.msk.bf16.vlgmr.msrb.gmra.mxu0 %vm308_vm1, %v766_v0 }
  0x26   : > { %736 = vmatmul.msk.bf16.gmra.mxu2 %vm308_vm1, %v767_v5 }
  0x27   : > { %739 = vmatmul.msk.bf16.gmra.mxu3 %vm308_vm1, %v767_v5 }
  0x34   : > { %733 = vmatmul.msk.bf16.gmra.mxu1 %vm308_vm1, %v767_v5  ;;  %742 = vmatmul.msk.bf16.gmra.mxu0 %vm308_vm1, %v767_v5 }
  0x36   : > { %747 = vmatmul.msk.bf16.vlgmr.msrb.gmra.mxu2 %vm308_vm1, %v766_v0 }
  0x37   : > { %750 = vmatmul.msk.bf16.vlgmr.msrb.gmra.mxu3 %vm308_vm1, %v766_v0 }
  0x44   : > { %744 = vmatmul.msk.bf16.vlgmr.msra.gmra.mxu1 %vm308_vm1, %v766_v0  ;;  %760 = vmatmul.msk.bf16.vlgmr.msra.gmra.mxu0 %vm308_vm1, %v768_v25 }
  0x46   : > { %748 = vmatmul.msk.bf16.gmra.mxu2 %vm308_vm1, %v767_v5 }
  0x47   : > { %751 = vmatmul.msk.bf16.gmra.mxu3 %vm308_vm1, %v767_v5 }
  0x54   : > { %745 = vmatmul.msk.bf16.gmra.mxu1 %vm308_vm1, %v767_v5  ;;  %761 = vmatmul.msk.bf16.gmra.mxu0 %vm308_vm1, %v769_v26 }
  0x80   : > { %v580_v61 = vpop.permute.xlu0 %579 }
  0x8a   : > { %v585_v11 = vpop.permute.xlu0 %584 }
  0x91   : > { %v328_v27 = vpop.f32.mrf.mxu0  ;;  %v333_v28 = vpop.f32.mrf.mxu1 }
  0x99   : > { %v380_v29 = vpop.f32.mrf.mxu2  ;;  %v330_v30 = vpop.f32.mrf.mxu0 }
  0x9a   : > { %v335_v31 = vpop.f32.mrf.mxu1  ;;  %v408_v32 = vpop.f32.mrf.mxu3 }
  0xa1   : > { %v382_v33 = vpop.f32.mrf.mxu2  ;;  %v436_v35 = vpop.f32.mrf.mxu0 }
  0xa2   : > { %v352_v34 = vpop.f32.mrf.mxu1  ;;  %v410_v36 = vpop.f32.mrf.mxu3 }
  0xa3   : > { %v362_v44 = vmax.f32 %v328_v27, %v352_v34  ;;  %v590_v27 = vpop.permute.xlu1 %589 }
  0xa5   : > { %v390_v46 = vmax.f32 %v362_v44, %v380_v29 }
  0xa7   : > { %v418_v49 = vmax.f32 %v390_v46, %v408_v32 }
  0xa9   : > { %v385_v37 = vpop.f32.mrf.mxu2  ;;  %v438_v39 = vpop.f32.mrf.mxu0  ;;  %v446_v53 = vmax.f32 %v418_v49, %v436_v35 }
  0xaa   : > { %v354_v38 = vpop.f32.mrf.mxu1  ;;  %v413_v40 = vpop.f32.mrf.mxu3 }
  0xab   : > { %v363_v50 = vmax.f32 %v330_v30, %v354_v38 }
  0xad   : > { %v391_v54 = vmax.f32 %v363_v50, %v382_v33 }
  0xaf   : > { %v419_v58 = vmax.f32 %v391_v54, %v410_v36 }
  0xb1   : > { %v441_v42 = vpop.f32.mrf.mxu0  ;;  %v387_v43 = vpop.f32.mrf.mxu2  ;;  %v447_v63 = vmax.f32 %v419_v58, %v438_v39 }
  0xb2   : > { %v357_v41 = vpop.f32.mrf.mxu1  ;;  %v415_v45 = vpop.f32.mrf.mxu3 }
  0xb3   : > { %v364_v59 = vmax.f32 %v333_v28, %v357_v41 }
  0xb5   : > { %v392_v0 = vmax.f32 %v364_v59, %v385_v37 }
  0xb7   : > { %v420_v6 = vmax.f32 %v392_v0, %v413_v40  ;;  %v595_v40 = vpop.permute.xlu1 %594 }
  0xb9   : > { %v443_v48 = vpop.f32.mrf.mxu0  ;;  %v492_v51 = vpop.f32.mrf.mxu2  ;;  %v448_v12 = vmax.f32 %v420_v6, %v441_v42 }
  0xba   : > { %v359_v47 = vpop.f32.mrf.mxu1  ;;  %v520_v52 = vpop.f32.mrf.mxu3 }
  0xbb   : > { %v365_v7 = vmax.f32 %v335_v31, %v359_v47 }
  0xbd   : > { %v393_v13 = vmax.f32 %v365_v7, %v387_v43 }
  0xbf   : > { %v421_v21 = vmax.f32 %v393_v13, %v415_v45 }
  0xc1   : > { %v563_v56 = vpop.f32.mrf.mxu0  ;;  %v494_v62 = vpop.f32.mrf.mxu2  ;;  %v449_v28 = vmax.f32 %v421_v21, %v443_v48 }
  0xc2   : > { %v464_v55 = vpop.f32.mrf.mxu1  ;;  %v522_v2 = vpop.f32.mrf.mxu3 }
  0xc3   : > { %v474_v57 = vmax.f32 %v446_v53, %v464_v55 }
  0xc5   : > { %v502_v60 = vmax.f32 %v474_v57, %v492_v51 }
  0xc7   : > { %v530_v1 = vmax.f32 %v502_v60, %v520_v52 }
  0xc9   : > { %v565_v5 = vpop.f32.mrf.mxu0  ;;  %v573_v8 = vadd.f32 %v563_v56, %v530_v1  ;;  %v497_v16 = vpop.f32.mrf.mxu2 }
  0xca   : > { %v466_v3 = vpop.f32.mrf.mxu1  ;;  %v525_v20 = vpop.f32.mrf.mxu3 }
  0xcb   : > { %v475_v4 = vmax.f32 %v447_v63, %v466_v3  ;;  %v597_v14 = vadd.f32 %v580_v61, %v573_v8 }
  0xcd   : > { %v503_v9 = vmax.f32 %v475_v4, %v494_v62  ;;  %v601_v22 = vmax.f32 %v597_v14, 0.0 }
  0xcf   : > { %v531_v10 = vmax.f32 %v503_v9, %v522_v2 }
  0xd1   : > { %v574_v15 = vadd.f32 %v565_v5, %v531_v10  ;;  %v568_v25 = vpop.f32.mrf.mxu0  ;;  %v499_v32 = vpop.f32.mrf.mxu2 }
  0xd2   : > { %v469_v17 = vpop.f32.mrf.mxu1  ;;  %v527_v35 = vpop.f32.mrf.mxu3 }
  0xd3   : > { %v598_v18 = vadd.f32 %v585_v11, %v574_v15  ;;  %v476_v19 = vmax.f32 %v448_v12, %v469_v17 }
  0xd5   : > { %v602_v23 = vmax.f32 %v598_v18, 0.0  ;;  %v504_v24 = vmax.f32 %v476_v19, %v497_v16 }
  0xd7   : > { %v773_v26 = vpack.c.bf16 %v602_v23, %v601_v22  ;;  %v532_v29 = vmax.f32 %v504_v24, %v525_v20 }
  0xd9   : > { %774 = vst [vmem:[%s283_s28] sm:$0xff] %v773_v26   ;;  %v575_v33 = vadd.f32 %v568_v25, %v532_v29  ;;  %v570_v37 = vpop.f32.mrf.mxu0 }
  0xda   : > { %v471_v30 = vpop.f32.mrf.mxu1 }
  0xdb   : > { %v477_v31 = vmax.f32 %v449_v28, %v471_v30  ;;  %v599_v38 = vadd.f32 %v590_v27, %v575_v33 }
  0xdd   : > { %v505_v34 = vmax.f32 %v477_v31, %v499_v32  ;;  %v603_v42 = vmax.f32 %v599_v38, 0.0 }
  0xdf   : > { %v533_v36 = vmax.f32 %v505_v34, %v527_v35 }
  0xe1   : > { %v576_v39 = vadd.f32 %v570_v37, %v533_v36 }
  0xe3   : > { %v600_v41 = vadd.f32 %v595_v40, %v576_v39 }
  0xe5   : > { %v604_v43 = vmax.f32 %v600_v41, 0.0 }
  0xe7   : > { %v778_v44 = vpack.c.bf16 %v604_v43, %v603_v42 }
  0xe9   : > { %780 = vst [vmem:[%s283_s28 + $0x8] sm:$0xff] %v778_v44  }
  0xea PF: > { %s15_s20 = sadd.s32 1, %s831_s20   ;;  %s962_s18 = smov %s827_s19 }
  0xeb   : > { %p12_p5 = scmp.ge.s32.totalorder %s15_s20, 4   ;;  %s963_s19 = smov %s965_s21 }
  0xed   :  { %14 = sbr.rel (!%p12_p5) target bundleno = 2 (0x2), region = 80 }

</bundles_post_ra>
